<compile_context>
chip_gen: v7x
topology: tpu7x:2x2x1
jax: 0.10.0
libtpu: 0.0.40
codegen_flags: <defaults>
</compile_context>

<pallas_src>
import functools

import jax
import jax.numpy as jnp
from jax.experimental import pallas as pl
from jax.experimental.pallas import tpu as pltpu


def mqa_kernel(x_ref, pk_ref, pv_ref, w_in_ref, wo_ref,
               y_ref, K_ref, V_ref, *, h, kdim, vdim):
    # x_ref:   (tb, d)
    # pk_ref:  (tb, m, k)         pv_ref: (tb, m, v)
    # w_in_ref:(d, h*k + k + v)   wo_ref: (h*v, d)
    tb = x_ref.shape[0]
    m = pk_ref.shape[1]

    x = x_ref[...]                                                    # (tb, d)

    # --- fused input projections: one MXU matmul, then static lane slices ---
    proj = jnp.dot(x, w_in_ref[...],
                   preferred_element_type=jnp.float32)                # (tb, h*k+k+v)
    q = proj[:, :h * kdim].reshape(tb, h, kdim)                       # (tb, h, k)
    new_k = proj[:, h * kdim:h * kdim + kdim]                         # (tb, k)
    new_v = proj[:, h * kdim + kdim:]                                 # (tb, v)

    pk = pk_ref[...].astype(jnp.float32)                              # (tb, m, k)
    pv = pv_ref[...].astype(jnp.float32)                              # (tb, m, v)

    # --- logits, split: cache part (batched MXU dot) + new row (VPU reduce) ---
    logits_prev = jnp.einsum('bhk,bmk->bhm', q, pk,
                             preferred_element_type=jnp.float32)      # (tb, h, m)
    logit_new = jnp.sum(q * new_k[:, None, :], axis=-1,
                        keepdims=True)                                # (tb, h, 1)

    # --- softmax over the (m+1) memory axis, no concatenate / no re-slice ---
    mx = jnp.maximum(jnp.max(logits_prev, axis=-1, keepdims=True), logit_new)
    p_prev = jnp.exp(logits_prev - mx)                                # (tb, h, m)
    p_new = jnp.exp(logit_new - mx)                                   # (tb, h, 1)
    inv = pl.reciprocal(jnp.sum(p_prev, axis=-1, keepdims=True) + p_new,
                        approx=True)                                  # (tb, h, 1)

    # --- weighted sum, split the same way ---
    o = jnp.einsum('bhm,bmv->bhv', p_prev * inv, pv,
                   preferred_element_type=jnp.float32)                # (tb, h, v)
    o = o + (p_new * inv) * new_v[:, None, :]                         # new row term

    # --- output projection: (tb, h*v) @ (h*v, d) ---
    y = jnp.dot(o.reshape(tb, h * vdim), wo_ref[...],
                preferred_element_type=jnp.float32)                   # (tb, d)
    y_ref[...] = y.astype(y_ref.dtype)

    # --- KV append: pass-through store of the old cache + one new row ---
    K_ref[:, :m, :] = pk.astype(K_ref.dtype)
    K_ref[:, m:, :] = new_k.astype(K_ref.dtype)[:, None, :]
    V_ref[:, :m, :] = pv.astype(V_ref.dtype)
    V_ref[:, m:, :] = new_v.astype(V_ref.dtype)[:, None, :]


def mqa_forward(x, prev_K, prev_V, Wq, Wk, Wv, Wo, *, block_b=None):
    b, d = x.shape
    _, m, kdim = prev_K.shape
    _, _, vdim = prev_V.shape
    h = Wq.shape[0]

    # Parameter-setup glue (plain JAX, runs once): fuse the three input
    # projections into a single MXU-friendly matrix and flatten Wo to 2-D.
    Wq2 = jnp.transpose(Wq, (1, 0, 2)).reshape(d, h * kdim)   # (d, h*k)
    W_in = jnp.concatenate([Wq2, Wk, Wv], axis=1)             # (d, h*k + k + v)
    Wo2 = Wo.reshape(h * vdim, d)                             # (h*v, d)

    # Batch blocking: whole batch per step when small, otherwise 128-row blocks
    # (multiple of 8 keeps the x / y block sublane dims legal).
    if block_b is None:
        block_b = b if b <= 128 else 128
    grid = (pl.cdiv(b, block_b),)

    out_shape = (
        jax.ShapeDtypeStruct((b, d), x.dtype),
        jax.ShapeDtypeStruct((b, m + 1, kdim), prev_K.dtype),
        jax.ShapeDtypeStruct((b, m + 1, vdim), prev_V.dtype),
    )

    grid_spec = pltpu.PrefetchScalarGridSpec(
        num_scalar_prefetch=0,
        grid=grid,
        in_specs=[
            pl.BlockSpec((block_b, d), lambda i: (i, 0)),
            pl.BlockSpec((block_b, m, kdim), lambda i: (i, 0, 0)),
            pl.BlockSpec((block_b, m, vdim), lambda i: (i, 0, 0)),
            pl.BlockSpec((d, h * kdim + kdim + vdim), lambda i: (0, 0)),
            pl.BlockSpec((h * vdim, d), lambda i: (0, 0)),
        ],
        out_specs=[
            pl.BlockSpec((block_b, d), lambda i: (i, 0)),
            pl.BlockSpec((block_b, m + 1, kdim), lambda i: (i, 0, 0)),
            pl.BlockSpec((block_b, m + 1, vdim), lambda i: (i, 0, 0)),
        ],
    )

    kernel = functools.partial(mqa_kernel, h=h, kdim=kdim, vdim=vdim)
    return pl.pallas_call(
        kernel,
        out_shape=out_shape,
        grid_spec=grid_spec,
        compiler_params=pltpu.CompilerParams(
            dimension_semantics=("parallel",),
            vmem_limit_bytes=32 * 1024 * 1024,
        ),
    )(x, prev_K, prev_V, W_in, Wo2)


def ref_forward(x, prev_K, prev_V, Wq, Wk, Wv, Wo):
    # Pure-JAX reference mirroring the PyTorch module exactly.
    q = jnp.einsum('bd,hdk->bhk', x, Wq)
    K = jnp.concatenate(
        [prev_K, jnp.einsum('bd,dk->bk', x, Wk)[:, None, :]], axis=1)
    V = jnp.concatenate(
        [prev_V, jnp.einsum('bd,dv->bv', x, Wv)[:, None, :]], axis=1)
    logits = jnp.einsum('bhk,bmk->bhm', q, K)
    w = jax.nn.softmax(logits, axis=-1)
    o = jnp.einsum('bhm,bmv->bhv', w, V)
    y = jnp.einsum('bhv,hvd->bd', o, Wo)
    return y, K, V


if __name__ == "__main__":
    b, h, d, k, v, m = 2, 4, 32, 16, 16, 8

    key = jax.random.PRNGKey(0)
    keys = jax.random.split(key, 7)
    scale = 0.1  # deterministic scaled-normal init (keeps softmax well-conditioned)
    Wq = scale * jax.random.normal(keys[0], (h, d, k), jnp.float32)
    Wk = scale * jax.random.normal(keys[1], (d, k), jnp.float32)
    Wv = scale * jax.random.normal(keys[2], (d, v), jnp.float32)
    Wo = scale * jax.random.normal(keys[3], (h, v, d), jnp.float32)

    x = jax.random.normal(keys[4], (b, d), jnp.float32)
    prev_K = jax.random.normal(keys[5], (b, m, k), jnp.float32)
    prev_V = jax.random.normal(keys[6], (b, m, v), jnp.float32)

    y, K_out, V_out = mqa_forward(x, prev_K, prev_V, Wq, Wk, Wv, Wo)
    jax.block_until_ready((y, K_out, V_out))

    y_ref, K_ref_, V_ref_ = ref_forward(x, prev_K, prev_V, Wq, Wk, Wv, Wo)
    # Tolerance slightly loosened vs exact f32 because the softmax denominator
    # uses the EUP approximate reciprocal (rel. err ~2e-4).
    assert jnp.allclose(y, y_ref, rtol=2e-3, atol=2e-3), "y mismatch"
    assert jnp.allclose(K_out, K_ref_, rtol=2e-3, atol=2e-3), "K mismatch"
    assert jnp.allclose(V_out, V_ref_, rtol=2e-3, atol=2e-3), "V mismatch"

    print("KERNEL_OK")
</pallas_src>

<mosaic_0001>
module attributes {stable_mosaic.version = 11 : i64} {
  func.func @mqa_kernel(%arg0: i32, %arg1: memref<2x32xf32, #tpu.memory_space<vmem>>, %arg2: memref<2x8x16xf32, #tpu.memory_space<vmem>>, %arg3: memref<2x8x16xf32, #tpu.memory_space<vmem>>, %arg4: memref<32x96xf32, #tpu.memory_space<vmem>>, %arg5: memref<64x32xf32, #tpu.memory_space<vmem>>, %arg6: memref<2x32xf32, #tpu.memory_space<vmem>>, %arg7: memref<2x9x16xf32, #tpu.memory_space<vmem>>, %arg8: memref<2x9x16xf32, #tpu.memory_space<vmem>>) attributes {dimension_semantics = [#tpu.dimension_semantics<parallel>], iteration_bounds = array<i64: 1>, scalar_prefetch = 0 : i64, scratch_operands = 0 : i64, tpu.core_type = #tpu.core_type<tc>, window_params = [{transform_indices = @transform_0, window_bounds = array<i64: 2, 32>}, {transform_indices = @transform_1, window_bounds = array<i64: 2, 8, 16>}, {transform_indices = @transform_2, window_bounds = array<i64: 2, 8, 16>}, {pipeline_mode = #tpu.pipeline_mode<synchronous>, transform_indices = @transform_3, window_bounds = array<i64: 32, 96>}, {pipeline_mode = #tpu.pipeline_mode<synchronous>, transform_indices = @transform_4, window_bounds = array<i64: 64, 32>}, {transform_indices = @transform_5, window_bounds = array<i64: 2, 32>}, {transform_indices = @transform_6, window_bounds = array<i64: 2, 9, 16>}, {transform_indices = @transform_7, window_bounds = array<i64: 2, 9, 16>}]} {
    %c0 = arith.constant 0 : index
    %c0_0 = arith.constant 0 : index
    %0 = vector.load %arg1[%c0, %c0_0] : memref<2x32xf32, #tpu.memory_space<vmem>>, vector<2x32xf32>
    %c0_1 = arith.constant 0 : index
    %c0_2 = arith.constant 0 : index
    %1 = vector.load %arg4[%c0_1, %c0_2] : memref<32x96xf32, #tpu.memory_space<vmem>>, vector<32x96xf32>
    %cst = arith.constant dense<0.000000e+00> : vector<2x96xf32>
    %2 = tpu.matmul %0, %1, %cst {dimension_numbers = #tpu.dot_dimension_numbers<[1], [0], [0], [1], [0, 0, 1, 1], [], []>} : vector<2x32xf32>, vector<32x96xf32>, vector<2x96xf32> -> vector<2x96xf32>
    %3 = vector.extract_strided_slice %2 {offsets = [0, 0], sizes = [2, 64], strides = [1, 1]} : vector<2x96xf32> to vector<2x64xf32>
    %4 = vector.shape_cast %3 : vector<2x64xf32> to vector<2x4x16xf32>
    %5 = vector.extract_strided_slice %2 {offsets = [0, 64], sizes = [2, 16], strides = [1, 1]} : vector<2x96xf32> to vector<2x16xf32>
    %6 = vector.extract_strided_slice %2 {offsets = [0, 80], sizes = [2, 16], strides = [1, 1]} : vector<2x96xf32> to vector<2x16xf32>
    %c0_3 = arith.constant 0 : index
    %c0_4 = arith.constant 0 : index
    %c0_5 = arith.constant 0 : index
    %7 = vector.load %arg2[%c0_3, %c0_4, %c0_5] : memref<2x8x16xf32, #tpu.memory_space<vmem>>, vector<2x8x16xf32>
    %c0_6 = arith.constant 0 : index
    %c0_7 = arith.constant 0 : index
    %c0_8 = arith.constant 0 : index
    %8 = vector.load %arg3[%c0_6, %c0_7, %c0_8] : memref<2x8x16xf32, #tpu.memory_space<vmem>>, vector<2x8x16xf32>
    "tpu.trace_start"() <{level = 10 : i32, message = "bhk,bmk->bhm"}> : () -> ()
    %cst_9 = arith.constant dense<0.000000e+00> : vector<2x4x8xf32>
    %9 = tpu.matmul %4, %7, %cst_9 {dimension_numbers = #tpu.dot_dimension_numbers<[2], [2], [1], [1], [0, 0, 0, 1, 1, 1], [0], [0]>} : vector<2x4x16xf32>, vector<2x8x16xf32>, vector<2x4x8xf32> -> vector<2x4x8xf32>
    "tpu.trace_stop"() : () -> ()
    %10 = vector.shape_cast %5 : vector<2x16xf32> to vector<2x1x16xf32>
    %11 = vector.broadcast %10 : vector<2x1x16xf32> to vector<2x4x16xf32>
    %12 = arith.mulf %4, %11 : vector<2x4x16xf32>
    %cst_10 = arith.constant dense<0.000000e+00> : vector<2x4xf32>
    %13 = vector.multi_reduction <add>, %12, %cst_10 [2] : vector<2x4x16xf32> to vector<2x4xf32>
    %14 = vector.shape_cast %13 : vector<2x4xf32> to vector<2x4x1xf32>
    %cst_11 = arith.constant dense<0xFF800000> : vector<2x4xf32>
    %15 = vector.multi_reduction <maximumf>, %9, %cst_11 [2] : vector<2x4x8xf32> to vector<2x4xf32>
    %16 = vector.shape_cast %15 : vector<2x4xf32> to vector<2x4x1xf32>
    %17 = arith.maximumf %16, %14 : vector<2x4x1xf32>
    %18 = vector.broadcast %17 : vector<2x4x1xf32> to vector<2x4x8xf32>
    %19 = arith.subf %9, %18 : vector<2x4x8xf32>
    %20 = math.exp %19 : vector<2x4x8xf32>
    %21 = arith.subf %14, %17 : vector<2x4x1xf32>
    %22 = math.exp %21 : vector<2x4x1xf32>
    %cst_12 = arith.constant dense<0.000000e+00> : vector<2x4xf32>
    %23 = vector.multi_reduction <add>, %20, %cst_12 [2] : vector<2x4x8xf32> to vector<2x4xf32>
    %24 = vector.shape_cast %23 : vector<2x4xf32> to vector<2x4x1xf32>
    %25 = arith.addf %24, %22 : vector<2x4x1xf32>
    %26 = tpu.reciprocal %25 {approx = true} : vector<2x4x1xf32> -> vector<2x4x1xf32>
    %27 = vector.broadcast %26 : vector<2x4x1xf32> to vector<2x4x8xf32>
    %28 = arith.mulf %20, %27 : vector<2x4x8xf32>
    "tpu.trace_start"() <{level = 10 : i32, message = "bhm,bmv->bhv"}> : () -> ()
    %cst_13 = arith.constant dense<0.000000e+00> : vector<2x4x16xf32>
    %29 = tpu.matmul %28, %8, %cst_13 {dimension_numbers = #tpu.dot_dimension_numbers<[2], [1], [1], [2], [0, 0, 0, 1, 1, 2], [0], [0]>} : vector<2x4x8xf32>, vector<2x8x16xf32>, vector<2x4x16xf32> -> vector<2x4x16xf32>
    "tpu.trace_stop"() : () -> ()
    %30 = arith.mulf %22, %26 : vector<2x4x1xf32>
    %31 = vector.shape_cast %6 : vector<2x16xf32> to vector<2x1x16xf32>
    %32 = vector.broadcast %30 : vector<2x4x1xf32> to vector<2x4x16xf32>
    %33 = vector.broadcast %31 : vector<2x1x16xf32> to vector<2x4x16xf32>
    %34 = arith.mulf %32, %33 : vector<2x4x16xf32>
    %35 = arith.addf %29, %34 : vector<2x4x16xf32>
    %36 = vector.shape_cast %35 : vector<2x4x16xf32> to vector<2x64xf32>
    %c0_14 = arith.constant 0 : index
    %c0_15 = arith.constant 0 : index
    %37 = vector.load %arg5[%c0_14, %c0_15] : memref<64x32xf32, #tpu.memory_space<vmem>>, vector<64x32xf32>
    %cst_16 = arith.constant dense<0.000000e+00> : vector<2x32xf32>
    %38 = tpu.matmul %36, %37, %cst_16 {dimension_numbers = #tpu.dot_dimension_numbers<[1], [0], [0], [1], [0, 0, 1, 1], [], []>} : vector<2x64xf32>, vector<64x32xf32>, vector<2x32xf32> -> vector<2x32xf32>
    %c0_17 = arith.constant 0 : index
    %c0_18 = arith.constant 0 : index
    %39 = vector.load %arg6[%c0_17, %c0_18] : memref<2x32xf32, #tpu.memory_space<vmem>>, vector<2x32xf32>
    tpu.vector_store %arg6[%c0_17, %c0_18], %38 {strides = array<i32>} : memref<2x32xf32, #tpu.memory_space<vmem>>, vector<2x32xf32>,
    %c0_19 = arith.constant 0 : index
    %c0_20 = arith.constant 0 : index
    %c0_21 = arith.constant 0 : index
    %40 = vector.load %arg7[%c0_19, %c0_20, %c0_21] : memref<2x9x16xf32, #tpu.memory_space<vmem>>, vector<2x8x16xf32>
    tpu.vector_store %arg7[%c0_19, %c0_20, %c0_21], %7 {strides = array<i32>} : memref<2x9x16xf32, #tpu.memory_space<vmem>>, vector<2x8x16xf32>,
    %41 = vector.shape_cast %5 : vector<2x16xf32> to vector<2x1x16xf32>
    %c0_22 = arith.constant 0 : index
    %c8 = arith.constant 8 : index
    %c0_23 = arith.constant 0 : index
    %42 = vector.load %arg7[%c0_22, %c8, %c0_23] : memref<2x9x16xf32, #tpu.memory_space<vmem>>, vector<2x1x16xf32>
    tpu.vector_store %arg7[%c0_22, %c8, %c0_23], %41 {strides = array<i32>} : memref<2x9x16xf32, #tpu.memory_space<vmem>>, vector<2x1x16xf32>,
    %c0_24 = arith.constant 0 : index
    %c0_25 = arith.constant 0 : index
    %c0_26 = arith.constant 0 : index
    %43 = vector.load %arg8[%c0_24, %c0_25, %c0_26] : memref<2x9x16xf32, #tpu.memory_space<vmem>>, vector<2x8x16xf32>
    tpu.vector_store %arg8[%c0_24, %c0_25, %c0_26], %8 {strides = array<i32>} : memref<2x9x16xf32, #tpu.memory_space<vmem>>, vector<2x8x16xf32>,
    %44 = vector.shape_cast %6 : vector<2x16xf32> to vector<2x1x16xf32>
    %c0_27 = arith.constant 0 : index
    %c8_28 = arith.constant 8 : index
    %c0_29 = arith.constant 0 : index
    %45 = vector.load %arg8[%c0_27, %c8_28, %c0_29] : memref<2x9x16xf32, #tpu.memory_space<vmem>>, vector<2x1x16xf32>
    tpu.vector_store %arg8[%c0_27, %c8_28, %c0_29], %44 {strides = array<i32>} : memref<2x9x16xf32, #tpu.memory_space<vmem>>, vector<2x1x16xf32>,
    return
  }
  func.func @transform_0(%arg0: i32) -> (i32, i32) {
    %c0_i32 = arith.constant 0 : i32
    %c0_i32_0 = arith.constant 0 : i32
    return %arg0, %c0_i32 : i32, i32
  }
  func.func @transform_1(%arg0: i32) -> (i32, i32, i32) {
    %c0_i32 = arith.constant 0 : i32
    %c0_i32_0 = arith.constant 0 : i32
    %c0_i32_1 = arith.constant 0 : i32
    return %arg0, %c0_i32, %c0_i32_0 : i32, i32, i32
  }
  func.func @transform_2(%arg0: i32) -> (i32, i32, i32) {
    %c0_i32 = arith.constant 0 : i32
    %c0_i32_0 = arith.constant 0 : i32
    %c0_i32_1 = arith.constant 0 : i32
    return %arg0, %c0_i32, %c0_i32_0 : i32, i32, i32
  }
  func.func @transform_3(%arg0: i32) -> (i32, i32) {
    %c0_i32 = arith.constant 0 : i32
    %c0_i32_0 = arith.constant 0 : i32
    %c0_i32_1 = arith.constant 0 : i32
    return %c0_i32, %c0_i32_0 : i32, i32
  }
  func.func @transform_4(%arg0: i32) -> (i32, i32) {
    %c0_i32 = arith.constant 0 : i32
    %c0_i32_0 = arith.constant 0 : i32
    %c0_i32_1 = arith.constant 0 : i32
    return %c0_i32, %c0_i32_0 : i32, i32
  }
  func.func @transform_5(%arg0: i32) -> (i32, i32) {
    %c0_i32 = arith.constant 0 : i32
    %c0_i32_0 = arith.constant 0 : i32
    return %arg0, %c0_i32 : i32, i32
  }
  func.func @transform_6(%arg0: i32) -> (i32, i32, i32) {
    %c0_i32 = arith.constant 0 : i32
    %c0_i32_0 = arith.constant 0 : i32
    %c0_i32_1 = arith.constant 0 : i32
    return %arg0, %c0_i32, %c0_i32_0 : i32, i32, i32
  }
  func.func @transform_7(%arg0: i32) -> (i32, i32, i32) {
    %c0_i32 = arith.constant 0 : i32
    %c0_i32_0 = arith.constant 0 : i32
    %c0_i32_1 = arith.constant 0 : i32
    return %arg0, %c0_i32, %c0_i32_0 : i32, i32, i32
  }
}

</mosaic_0001>

<bundles_post_ra>
// kernel: tpu_custom_call.1
= control target key start
LH: loop header
LB: loop body
LE: loop exit
PB: predicated region body
PF: predicated region fallthrough
CT: control target
= control target key end

     0   :  { %v851_v3 = vmov 0.0|0.0   ;;  %vm852_vm0 = vmmov 0   ;;  %v853_v6 = vmov 0.0   ;;  %s1062_s0 = inlined_call_operand.vmem [shape: f32[2,32], index: 0, kind: input, shape index: {}]   ;;  %s1063_s1 = inlined_call_operand.vmem [shape: f32[2,8,16], index: 1, kind: input, shape index: {}]   ;;  %s1064_s2 = inlined_call_operand.vmem [shape: f32[2,8,16], index: 2, kind: input, shape index: {}]   ;;  %s1065_s3 = inlined_call_operand.vmem [shape: f32[32,96], index: 3, kind: input, shape index: {}]   ;;  %s1066_s4 = inlined_call_operand.vmem [shape: f32[64,32], index: 4, kind: input, shape index: {}]   ;;  %s1067_s5 = inlined_call_operand.hbm [shape: f32[2,32], index: 5, kind: output, shape index: {0}]   ;;  %s1068_s6 = inlined_call_operand.vmem [shape: f32[2,9,16], index: 6, kind: output, shape index: {1}]   ;;  %s1069_s7 = inlined_call_operand.vmem [shape: f32[2,9,16], index: 7, kind: output, shape index: {2}]  }
   0x1   :  { %v25_v0 = vld [vmem:[%s1065_s3] sm:$0xff]  ;;  %v26_v1 = vld [vmem:[%s1065_s3 + $0x8] sm:$0xff]  ;;  %v27_v2 = vld [vmem:[%s1065_s3 + $0x10] sm:$0xff]  ;;  %783 = vmatprep.subr.bf16.mxu1 %v851_v3  ;;  %741 = vmatprep.mubr.msk.f32.mxu1 %vm852_vm0, %v853_v6 }
   0x2   :  { %v784_v4 = vpack.c.bf16 %v26_v1, %v25_v0  ;;  %v28_v5 = vld [vmem:[%s1065_s3 + $0x18] sm:$0xff] }
   0x3   :  { %13 = vsyncpa [#allocation3], 0  ;;  %754 = vmatprep.subr.mxu0 %v853_v6  ;;  %756 = vmatprep.mubr.msk.f32.mxu0 %vm852_vm0, %v853_v6  ;;  %v787_v7 = vpack.c.bf16 %v28_v5, %v27_v2  ;;  %v24_v8 = vld [vmem:[%s1062_s0] sm:$0x3]  ;;  %vm29_vm1 = vcmask 261120   ;;  %v117_v9 = vlaneseq  ;;  %vm142_vm2 = vcmask 130048  }
   0x4   :  { %785 = vmatpush3.bf16.msra.mxu1 %v784_v4  ;;  %v854_v10 = vmov 1966171168   ;;  %v138_v14 = vld [vmem:[%s1063_s1] sm:$0xff]  ;;  %v139_v17 = vld [vmem:[%s1063_s1 + $0x8] sm:$0xff]  ;;  %s855_s15 = smov 80   ;;  %s856_s16 = smov 112  }
   0x5   :  { %786 = vmatprep.subr.bf16.mxu1 %v851_v3  ;;  %v296_v11 = vunpack.c.l.s4 %v854_v10  ;;  %v118_v12 = vshrl.u32 %v117_v9, 7  ;;  %666 = vst.msk [vmem:[%s1068_s6] sm:$0xff] %vm142_vm2, %v138_v14  ;;  %667 = vst.msk [vmem:[%s1068_s6 + $0x10] sm:$0xff] %vm142_vm2, %v139_v17  ;;  %s857_s19 = smov 96   ;;  %s858_s1 = smov 64   ;;  %vm668_vm3 = vcmask 122880  }
   0x6   :  { %v859_v26 = vmov 1983009808   ;;  %v860_v29 = vmov 1934713408   ;;  %vm333_vm4 = vcmask 125952   ;;  %vm340_vm5 = vcmask 60416  }
   0x7   :  { %v297_v13 = vunpack.c.0.s8 %v296_v11  ;;  %v319_v20 = vsub.s32 0, %v118_v12  ;;  %v115_v27 = vunpack.c.l.s4 %v859_v26  ;;  %v131_v30 = vunpack.c.l.s4 %v860_v29  ;;  %v140_v10 = vld [vmem:[%s1064_s2] sm:$0xff]  ;;  %v141_v11 = vld [vmem:[%s1064_s2 + $0x8] sm:$0xff]  ;;  %s861_s2 = smov 48   ;;  %s862_s21 = smov 32  }
   0x8   :  { %788 = vmatpush3.bf16.msra.mxu1 %v787_v7  ;;  %755 = vmatpush3.msra.mxu0 %v140_v10  ;;  %671 = vst.msk [vmem:[%s1069_s7] sm:$0xff] %vm142_vm2, %v140_v10  ;;  %672 = vst.msk [vmem:[%s1069_s7 + $0x10] sm:$0xff] %vm142_vm2, %v141_v11  ;;  %vm383_vm6 = vcmask 64512   ;;  %vm580_vm7 = vcmask 392192   ;;  %vm590_vm8 = vcmask 523264   ;;  %s864_s25 = smov [#allocation2]  }
   0x9   :  { %744 = vmatprep.subr.mxu1 %v853_v6  ;;  %v300_v15 = vsub.s32 %v297_v13, %v118_v12  ;;  %v116_v28 = vunpack.c.0.s8 %v115_v27  ;;  %v132_v35 = vunpack.c.0.s8 %v131_v30  ;;  %789 = vmatprep.subr.bf16.mxu0 %v851_v3  ;;  %v582_v30 = vld [vmem:[%s1066_s4] sm:$0xff]  ;;  %s687_s26 = sshll.u32 %s864_s25, 4  ;;  %vm664_vm9 = vcmask 254976   ;;  %s688_s26 = int_to_ptr.vmem [resolvable:$true] %s687_s26 }
   0xa   :  { %s827_s27 = scalar_lea.vmem %s688_s26, 32  ;;  %p832_p1 = scmp.lt.s32.totalorder %s688_s26, %s688_s26 }
   0xb   :  { %742 = vmatmul.mubr.msk.f32.vlgmr.msra.gmra.mrb[0].mxu1 %vm29_vm1, %v24_v8  ;;  %v953_v33 = vsub.s32 %v116_v28, %v118_v12  ;;  %v957_v41 = vsub.s32 %v132_v35, %v118_v12  ;;  %v585_v35 = vld [vmem:[%s1066_s4 + $0x18] sm:$0xff]  ;;  %p828_p0 = scmp.ne.s32.totalorder %s688_s26, %s827_s27  ;;  %p833_p2 = scmp.lt.s32.totalorder %s827_s27, %s827_s27 }
   0xc   :  { %746 = vmatprep.mubr.msk.f32.mxu1 %vm852_vm0, %v853_v6 }
   0xd   :  { %p834_p3 = por %p833_p2, %p832_p1 }
   0xf   :  { %p835_p4 = pnand %p834_p3, %p828_p0 }
  0x11   :  { %745 = vmatpush3.xpose.msk.msra.mxu1 %vm142_vm2, %v138_v14 }
  0x12   :  { %749 = vmatprep.subr.mxu1 %v853_v6 }
  0xde   :  { %v99_v16 = vpop.f32.mrb[0].mxu1 }
  0xdf   :  { %110 = vrot.lane.b32.xlu1 %v99_v16, %s855_s15  ;;  %104 = vrot.lane.b32.xlu0 %v99_v16, %s856_s16  ;;  %v743_v18 = vpop.f32.mrb[1].mxu1  ;;  %v301_v19 = vrot.slane %v99_v16, %v300_v15 }
  0xe1   :  { %v309_v21 = vrot.slane %v301_v19, %v300_v15  ;;  %v302_v22 = vcombine.high %v301_v19, %v301_v19 }
  0xe3   :  { %107 = vrot.lane.b32.xlu0 %v99_v16, %s857_s19  ;;  %v947_v23 = vrot.slane %v309_v21, %v319_v20  ;;  %v316_v24 = vrot.slane %v302_v22, %v300_v15 }
  0xe5   :  { %325 = vrot.lane.b32.xlu1 %v947_v23, %s858_s1  ;;  %v950_v25 = vrot.slane %v316_v24, %v319_v20 }
  0xe7   :  { %327 = vrot.lane.b32.xlu0 %v950_v25, %s858_s1 }
 0x151   :  { %v111_v31 = vpop.permute.xlu1 %110  ;;  %v105_v32 = vpop.permute.xlu0 %104 }
 0x152   :  { %v121_v34 = vcombine.low %v105_v32, %v111_v31  ;;  %v583_v31 = vld [vmem:[%s1066_s4 + $0x8] sm:$0xff]  ;;  %v584_v32 = vld [vmem:[%s1066_s4 + $0x10] sm:$0xff] }
 0x154   :  { %v128_v39 = vrot.slane %v121_v34, %v953_v33  ;;  %v790_v34 = vpack.c.bf16 %v583_v31, %v582_v30 }
 0x155   :  { %v108_v36 = vpop.permute.xlu0 %107 }
 0x156   :  { %v113_v37 = vcombine.low %v99_v16, %v108_v36  ;;  %v793_v36 = vpack.c.bf16 %v585_v35, %v584_v32 }
 0x157   :  { %v326_v38 = vpop.permute.xlu1 %325 }
 0x158   :  { %v120_v40 = vrot.slane %v113_v37, %v953_v33  ;;  %669 = vst.msk [vmem:[%s1068_s6 + $0x8] sm:$0x1] %vm668_vm3, %v326_v38  ;;  %v586_v37 = vld [vmem:[%s1066_s4 + $0x20] sm:$0xff] }
 0x159   :  { %v328_v42 = vpop.permute.xlu0 %327 }
 0x15a   :  { %v129_v43 = vcombine.low %v120_v40, %v128_v39  ;;  %670 = vst.msk [vmem:[%s1068_s6 + $0x18] sm:$0x1] %vm668_vm3, %v328_v42 }
 0x15c   :  { %v136_v44 = vrot.slane %v129_v43, %v957_v41 }
 0x15e   :  { %v331_v45 = vmul.f32 %v326_v38, %v136_v44  ;;  %v137_v46 = vcombine.high %v136_v44, %v853_v6  ;;  %747 = vmatmul.mubr.msk.f32.vlgmr.msra.gmra.mrb[2].mxu1 %vm142_vm2, %v136_v44  ;;  %v587_v38 = vld [vmem:[%s1066_s4 + $0x28] sm:$0xff]  ;;  %v588_v44 = vld [vmem:[%s1066_s4 + $0x30] sm:$0xff] }
 0x15f   :  { %750 = vmatpush3.xpose.msk.msra.mxu1 %vm142_vm2, %v139_v17  ;;  %751 = vmatprep.mubr.msk.f32.mxu1 %vm852_vm0, %v853_v6  ;;  %v796_v39 = vpack.c.bf16 %v587_v38, %v586_v37 }
 0x160   :  { %v332_v47 = vmul.f32 %v328_v42, %v137_v46  ;;  %v334_v48 = vsel %vm333_vm4, %v331_v45, 0.0  ;;  %759 = vmatprep.subr.mxu1 %v853_v6  ;;  %v589_v45 = vld [vmem:[%s1066_s4 + $0x38] sm:$0xff]  ;;  %s863_s4 = smov 16  }
 0x161   :  { %335 = vadd.xlane.f32.xlu1 %v334_v48 }
 0x162   :  { %752 = vmatmul.mubr.msk.f32.vlgmr.msra.gmra.mrb[4].mxu1 %vm142_vm2, %v137_v46  ;;  %v337_v49 = vsel %vm333_vm4, %v332_v47, 0.0  ;;  %v799_v47 = vpack.c.bf16 %v589_v45, %v588_v44 }
 0x163   :  { %338 = vadd.xlane.f32.xlu0 %v337_v49  ;;  %761 = vmatprep.mubr.msk.f32.mxu1 %vm852_vm0, %v853_v6 }
 0x164   :  { %760 = vmatpush3.msra.mxu1 %v141_v11 }
 0x1ee   :  { %v336_v57 = vpop.xlane.xlu1 %335 }
 0x1f0   :  { %v339_v56 = vpop.xlane.xlu0 %338 }
 0x231   :  { %v215_v50 = vpop.f32.mrb[2].mxu1 }
 0x232   :  { %v748_v51 = vpop.f32.mrb[3].mxu1  ;;  %v341_v52 = vsel %vm340_vm5, %v215_v50, -inf }
 0x233   :  { %342 = vmax.xlane.f32.xlu0 %v341_v52 }
 0x235   :  { %v291_v53 = vpop.f32.mrb[4].mxu1 }
 0x236   :  { %v753_v54 = vpop.f32.mrb[5].mxu1  ;;  %v344_v55 = vsel %vm340_vm5, %v291_v53, -inf }
 0x237   :  { %345 = vmax.xlane.f32.xlu1 %v344_v55 }
 0x2c0   :  { %v343_v58 = vpop.xlane.xlu0 %342 }
 0x2c1   :  { %v347_v59 = vmax.f32 %v343_v58, %v336_v57 }
 0x2c3   :  { %v349_v60 = vsub.f32 %v215_v50, %v347_v59  ;;  %v355_v61 = vsub.f32 %v336_v57, %v347_v59 }
 0x2c4   :  { %v346_v62 = vpop.xlane.xlu1 %345 }
 0x2c5   :  { %v351_v63 = vmul.f32 1.442695, %v349_v60  ;;  %v348_v0 = vmax.f32 %v346_v62, %v339_v56  ;;  %v357_v12 = vmul.f32 1.442695, %v355_v61 }
 0x2c7   :  { %815 = vpow2.f32 %v351_v63  ;;  %v350_v1 = vsub.f32 %v291_v53, %v348_v0  ;;  %v356_v2 = vsub.f32 %v339_v56, %v348_v0 }
 0x2c9   :  { %v353_v4 = vmul.f32 1.442695, %v350_v1  ;;  %v359_v13 = vmul.f32 1.442695, %v356_v2 }
 0x2cb   :  { %817 = vpow2.f32 %v353_v4 }
 0x2cc   :  { %819 = vpow2.f32 %v357_v12 }
 0x2cd   :  { %821 = vpow2.f32 %v359_v13 }
 0x2d1   :  { %v816_v5 = vpop.eup %815 }
 0x2d2   :  { %v361_v7 = vsel %vm340_vm5, %v816_v5, 0.0 }
 0x2d3   :  { %362 = vadd.xlane.f32.xlu0 %v361_v7 }
 0x2d5   :  { %v818_v8 = vpop.eup %817 }
 0x2d6   :  { %v364_v9 = vsel %vm340_vm5, %v818_v8, 0.0  ;;  %v820_v14 = vpop.eup %819 }
 0x2d7   :  { %365 = vadd.xlane.f32.xlu1 %v364_v9  ;;  %v822_v17 = vpop.eup %821 }
 0x360   :  { %v363_v15 = vpop.xlane.xlu0 %362 }
 0x361   :  { %v367_v16 = vadd.f32 %v820_v14, %v363_v15 }
 0x363   :  { %823 = vrcp.f32 %v367_v16 }
 0x364   :  { %v366_v18 = vpop.xlane.xlu1 %365 }
 0x365   :  { %v368_v19 = vadd.f32 %v822_v17, %v366_v18 }
 0x367   :  { %825 = vrcp.f32 %v368_v19 }
 0x36d   :  { %v824_v20 = vpop.eup %823 }
 0x36e   :  { %v371_v21 = vmul.f32 %v824_v20, %v816_v5  ;;  %v373_v22 = vmul.f32 %v824_v20, %v820_v14 }
 0x370   :  { %757 = vmatmul.mubr.msk.f32.vlgmr.msra.gmra.mrb[0].mxu0 %vm383_vm6, %v371_v21  ;;  %v377_v24 = vmul.f32 %v373_v22, %v947_v23 }
 0x371   :  { %v826_v26 = vpop.eup %825  ;;  %780 = vmatprep.mubr.msk.f32.mxu0 %vm852_vm0, %v853_v6  ;;  %791 = vmatpush3.bf16.msra.mxu0 %v790_v34 }
 0x372   :  { %380 = vrot.lane.b32.xlu0 %v377_v24, %s861_s2  ;;  %v372_v27 = vmul.f32 %v826_v26, %v818_v8  ;;  %v374_v28 = vmul.f32 %v826_v26, %v822_v17  ;;  %792 = vmatprep.subr.bf16.mxu0 %v851_v3 }
 0x374   :  { %762 = vmatmul.mubr.msk.f32.vlgmr.msra.gmra.mrb[6].mxu1 %vm383_vm6, %v372_v27  ;;  %v378_v29 = vmul.f32 %v374_v28, %v950_v25 }
 0x375   :  { %794 = vmatpush3.bf16.msra.mxu0 %v793_v36 }
 0x376   :  { %458 = vrot.lane.b32.xlu1 %v378_v29, %s861_s2  ;;  %795 = vmatprep.subr.bf16.mxu0 %v851_v3 }
 0x379   :  { %797 = vmatpush3.bf16.msra.mxu0 %v796_v39 }
 0x37a   :  { %798 = vmatprep.subr.bf16.mxu0 %v851_v3 }
 0x37d   :  { %800 = vmatpush3.bf16.msra.mxu0 %v799_v47 }
 0x3e4   :  { %v381_v43 = vpop.permute.xlu0 %380 }
 0x3e8   :  { %v459_v48 = vpop.permute.xlu1 %458 }
 0x443   :  { %v453_v40 = vpop.f32.mrb[0].mxu0 }
 0x444   :  { %v758_v42 = vpop.f32.mrb[1].mxu0  ;;  %v454_v46 = vadd.f32 %v453_v40, %v381_v43 }
 0x446   :  { %v540_v52 = vrot.slane %v454_v46, %v953_v33 }
 0x447   :  { %v530_v49 = vpop.f32.mrb[6].mxu1 }
 0x448   :  { %v531_v50 = vadd.f32 %v530_v49, %v459_v48  ;;  %v763_v51 = vpop.f32.mrb[7].mxu1 }
 0x44a   :  { %v547_v53 = vrot.slane %v531_v50, %v953_v33 }
 0x44c   :  { %v548_v3 = vcombine.low %v540_v52, %v547_v53  ;;  %v549_v54 = vcombine.high %v540_v52, %v547_v53 }
 0x44e   :  { %v563_v55 = vrot.slane %v549_v54, %v957_v41  ;;  %v556_v56 = vrot.slane %v548_v3, %v957_v41 }
 0x450   :  { %571 = vrot.lane.b32.xlu0 %v563_v55, %s862_s21  ;;  %v564_v57 = vcombine.high %v556_v56, %v853_v6  ;;  %v565_v58 = vcombine.high %v563_v55, %v853_v6 }
 0x452   :  { %567 = vrot.lane.b32.xlu1 %v564_v57, %s863_s4 }
 0x454   :  { %673 = vrot.lane.b32.xlu0 %v947_v23, %s861_s2 }
 0x456   :  { %575 = vrot.lane.b32.xlu1 %v565_v58, %s861_s2 }
 0x45a   :  { %675 = vrot.lane.b32.xlu1 %v950_v25, %s861_s2 }
 0x4c2   :  { %v572_v33 = vpop.permute.xlu0 %571 }
 0x4c4   :  { %v568_v59 = vpop.permute.xlu1 %567 }
 0x4c5   :  { %v578_v41 = vsel %vm142_vm2, %v556_v56, %v568_v59 }
 0x4c6   :  { %v674_v60 = vpop.permute.xlu0 %673  ;;  %v579_v23 = vsel %vm29_vm1, %v578_v41, %v572_v33 }
 0x4c7   :  { %679 = vst.msk [vmem:[%s1069_s7 + $0x8] sm:$0x1] %vm668_vm3, %v674_v60 }
 0x4c8   :  { %v576_v6 = vpop.permute.xlu1 %575 }
 0x4c9   :  { %v581_v61 = vsel %vm580_vm7, %v579_v23, %v576_v6 }
 0x4ca   :  { %781 = vmatmul.mubr.msk.f32.vlgmr.msra.gmra.mrb[2].mxu0 %vm590_vm8, %v581_v61 }
 0x4cc   :  { %v676_v62 = vpop.permute.xlu1 %675 }
 0x4cd   :  { %680 = vst.msk [vmem:[%s1069_s7 + $0x18] sm:$0x1] %vm668_vm3, %v676_v62 }
 0x59d   :  { %v660_v25 = vpop.f32.mrb[2].mxu0 }
 0x59e   :  { %665 = vst.msk [vmem:[#allocation2] sm:$0x3] %vm664_vm9, %v660_v25  ;;  %v782_v63 = vpop.f32.mrb[3].mxu0 }
 0x59f   :  { %838 = shalt.err (!%p835_p4)
}
 0x5a0   :  { %s839_s30 = scalar_lea.hbm %s1067_s5, 32 }
 0x5a1   :  { %p840_p5 = scmp.ne.s32.totalorder %s1067_s5, %s839_s30  ;;  %p843_p6 = scmp.lt.u32.totalorder %s839_s30, %s1067_s5 }
 0x5a3   :  { %p845_p7 = pnand %p843_p6, %p840_p5 }
 0x5a5   :  { %848 = shalt.err (!%p845_p7)
}
 0x5a6   :  { %690 = dma.vmem_to_hbm [thread:$0]  %s688_s26, 32, %s1067_s5, [#allocation3]  }
 0x5a7   :  { %849 = dma.done.wait [#allocation3], 32  }
 0x5a8   :  { %850 = vsyncadd [#allocation3], 4294967264 }
 0x5a9   :  { %702 = vsyncpa [#allocation3], 1 }

</bundles_post_ra>
